<compile_context>
chip_gen: v5e
topology: v5e:2x2
jax: 0.10.0
libtpu: 0.0.40
codegen_flags: <defaults>
</compile_context>

<pallas_src>
import jax
import jax.numpy as jnp
from jax.experimental import pallas as pl
from jax.experimental.pallas import tpu as pltpu


# -----------------------------------------------------------------------------
# Kernels
# -----------------------------------------------------------------------------
def _mm_small_kernel(a_ref, b_ref, o_ref):
    # Batch dim squeezed: a_ref (M, K), b_ref (K, N), o_ref (M, N).
    o_ref[...] = jnp.dot(
        a_ref[...], b_ref[...], preferred_element_type=jnp.float32
    ).astype(o_ref.dtype)


def _mm_tiled_f32_kernel(a_ref, b_ref, o_ref):
    # f32 output: accumulate directly into the k-resident output block.
    @pl.when(pl.program_id(3) == 0)
    def _():
        o_ref[...] = jnp.zeros_like(o_ref)

    o_ref[...] += jnp.dot(
        a_ref[...], b_ref[...], preferred_element_type=jnp.float32
    )


def _mm_tiled_acc_kernel(a_ref, b_ref, o_ref, acc_ref):
    # Non-f32 output: f32 scratch accumulator, cast on the last k step.
    @pl.when(pl.program_id(3) == 0)
    def _():
        acc_ref[...] = jnp.zeros_like(acc_ref)

    acc_ref[...] += jnp.dot(
        a_ref[...], b_ref[...], preferred_element_type=jnp.float32
    )

    @pl.when(pl.program_id(3) == pl.num_programs(3) - 1)
    def _():
        o_ref[...] = acc_ref[...].astype(o_ref.dtype)


# -----------------------------------------------------------------------------
# Helpers
# -----------------------------------------------------------------------------
def _sublane_multiple(dtype):
    itemsize = jnp.dtype(dtype).itemsize
    if itemsize >= 4:
        return 8
    if itemsize == 2:
        return 16
    return 32


def _round_up(x, m):
    return ((x + m - 1) // m) * m


def _pick_tile(dim, target, align):
    """Largest tile <= target that divides `dim` and is a multiple of `align`.
    `dim` is guaranteed by the wrapper to already be a multiple of `align`."""
    if dim <= target:
        return dim
    t = (min(target, dim) // align) * align
    while t > align:
        if dim % t == 0:
            return t
        t -= align
    return align


# -----------------------------------------------------------------------------
# Wrapper
# -----------------------------------------------------------------------------
def mx_matmul(A, B, *, tm=512, tn=512, tk=512, small_batch_bytes=1 << 20):
    """Batched matmul: A [batch, M, K] @ B [batch, K, N] -> [batch, M, N]."""
    assert A.ndim == 3 and B.ndim == 3
    Bz, M, K = A.shape
    Bz2, K2, N = B.shape
    assert Bz == Bz2 and K == K2

    out_dtype = jnp.promote_types(A.dtype, B.dtype)
    if A.dtype != out_dtype:
        A = A.astype(out_dtype)
    if B.dtype != out_dtype:
        B = B.astype(out_dtype)

    itemsize = jnp.dtype(out_dtype).itemsize
    cost = pl.CostEstimate(
        flops=2 * Bz * M * N * K,
        transcendentals=0,
        bytes_accessed=(A.size + B.size + Bz * M * N) * itemsize,
    )

    # --- Small-problem fast path: one grid step per batch --------------------
    per_batch_bytes = (M * K + K * N + M * N) * itemsize
    if per_batch_bytes <= small_batch_bytes:
        return pl.pallas_call(
            _mm_small_kernel,
            out_shape=jax.ShapeDtypeStruct((Bz, M, N), out_dtype),
            grid=(Bz,),
            in_specs=[
                pl.BlockSpec((None, M, K), lambda b: (b, 0, 0)),
                pl.BlockSpec((None, K, N), lambda b: (b, 0, 0)),
            ],
            out_specs=pl.BlockSpec((None, M, N), lambda b: (b, 0, 0)),
            cost_estimate=cost,
            compiler_params=pltpu.CompilerParams(
                dimension_semantics=("parallel",)
            ),
        )(A, B)

    # --- Tiled path -----------------------------------------------------------
    sub = _sublane_multiple(out_dtype)
    M_p = _round_up(M, sub)
    N_p = _round_up(N, 128)
    K_p = _round_up(K, 128)

    # Zero-pad to aligned sizes (zeros contribute nothing to the contraction).
    if (M_p, K_p) != (M, K):
        A = jnp.pad(A, ((0, 0), (0, M_p - M), (0, K_p - K)))
    if (K_p, N_p) != (K, N):
        B = jnp.pad(B, ((0, 0), (0, K_p - K), (0, N_p - N)))

    tm_ = _pick_tile(M_p, tm, sub)
    tn_ = _pick_tile(N_p, tn, 128)
    tk_ = _pick_tile(K_p, tk, 128)

    # v7x megacore guard: keep at least 2 parallel grid steps so both TCs work.
    while Bz * (M_p // tm_) * (N_p // tn_) < 2:
        if tn_ >= 256 and (tn_ // 2) % 128 == 0:
            tn_ //= 2
        elif tm_ >= 2 * sub and tm_ % 2 == 0 and (tm_ // 2) % sub == 0:
            tm_ //= 2
        else:
            break

    # VMEM budget (double-buffered A/B/out + optional scratch); 12 MiB keeps us
    # under v5e's 16 MiB scoped-VMEM default and well under v6e/v7x defaults.
    need_scratch = jnp.dtype(out_dtype) != jnp.dtype(jnp.float32)

    def _vmem_bytes():
        b = 2 * (tm_ * tk_ + tk_ * tn_) * itemsize + 2 * tm_ * tn_ * itemsize
        if need_scratch:
            b += tm_ * tn_ * 4
        return b

    budget = 12 << 20
    while _vmem_bytes() > budget and tk_ > 128 and (tk_ // 2) % 128 == 0:
        tk_ //= 2
    while _vmem_bytes() > budget and tn_ > 128 and (tn_ // 2) % 128 == 0:
        tn_ //= 2
    while _vmem_bytes() > budget and tm_ > sub and (tm_ // 2) % sub == 0:
        tm_ //= 2

    grid = (Bz, M_p // tm_, N_p // tn_, K_p // tk_)

    kernel = _mm_tiled_acc_kernel if need_scratch else _mm_tiled_f32_kernel
    scratch = (
        [pltpu.VMEM((tm_, tn_), jnp.float32)] if need_scratch else []
    )

    out = pl.pallas_call(
        kernel,
        out_shape=jax.ShapeDtypeStruct((Bz, M_p, N_p), out_dtype),
        grid=grid,
        in_specs=[
            pl.BlockSpec((None, tm_, tk_), lambda b, i, j, k: (b, i, k)),
            pl.BlockSpec((None, tk_, tn_), lambda b, i, j, k: (b, k, j)),
        ],
        out_specs=pl.BlockSpec((None, tm_, tn_), lambda b, i, j, k: (b, i, j)),
        scratch_shapes=scratch,
        cost_estimate=cost,
        compiler_params=pltpu.CompilerParams(
            dimension_semantics=("parallel", "parallel", "parallel", "arbitrary")
        ),
    )(A, B)

    if (M_p, N_p) != (M, N):
        out = out[:, :M, :N]
    return out


# -----------------------------------------------------------------------------
# Test
# -----------------------------------------------------------------------------
if __name__ == "__main__":
    key = jax.random.PRNGKey(0)
    k_a, k_b, k_c, k_d = jax.random.split(key, 4)

    # 1) Tiny shapes from the module's typical usage — small (per-batch) path.
    batch, M, K, N = 2, 8, 32, 16
    A = jax.random.normal(k_a, (batch, M, K), dtype=jnp.float32)
    B = jax.random.normal(k_b, (batch, K, N), dtype=jnp.float32)

    out = jax.block_until_ready(mx_matmul(A, B))
    ref = jnp.matmul(A, B, precision=jax.lax.Precision.HIGHEST)
    assert out.shape == (batch, M, N)
    assert out.dtype == jnp.float32
    assert jnp.allclose(out, ref, atol=5e-2, rtol=2e-2), "small-path mismatch"

    # 2) Moderate shapes — exercises the tiled accumulate-into-output path
    #    (grid = (2, 1, 1, 2) with tm=512, tn=256, tk=512 after tile selection).
    batch2, M2, K2, N2 = 2, 512, 1024, 256
    A2 = jax.random.normal(k_c, (batch2, M2, K2), dtype=jnp.float32)
    B2 = jax.random.normal(k_d, (batch2, K2, N2), dtype=jnp.float32)

    out2 = jax.block_until_ready(mx_matmul(A2, B2))
    ref2 = jnp.matmul(A2, B2, precision=jax.lax.Precision.HIGHEST)
    assert out2.shape == (batch2, M2, N2)
    assert jnp.allclose(out2, ref2, atol=1.0, rtol=2e-2), "tiled-path mismatch"

    # 3) Non-aligned N — exercises the lane padding + slice path.
    batch3, M3, K3, N3 = 1, 256, 384, 200
    A3 = jax.random.normal(k_c, (batch3, M3, K3), dtype=jnp.float32)
    B3 = jax.random.normal(k_d, (batch3, K3, N3), dtype=jnp.float32)
    out3 = jax.block_until_ready(mx_matmul(A3, B3, small_batch_bytes=0))
    ref3 = jnp.matmul(A3, B3, precision=jax.lax.Precision.HIGHEST)
    assert out3.shape == (batch3, M3, N3)
    assert jnp.allclose(out3, ref3, atol=0.5, rtol=2e-2), "padded-path mismatch"

    print("KERNEL_OK")
</pallas_src>

<mosaic_0001>
module attributes {stable_mosaic.version = 11 : i64} {
  func.func @_mm_small_kernel(%arg0: i32, %arg1: memref<1x8x32xf32, #tpu.memory_space<vmem>>, %arg2: memref<1x32x16xf32, #tpu.memory_space<vmem>>, %arg3: memref<1x8x16xf32, #tpu.memory_space<vmem>>) attributes {dimension_semantics = [#tpu.dimension_semantics<parallel>], iteration_bounds = array<i64: 2>, scalar_prefetch = 0 : i64, scratch_operands = 0 : i64, tpu.core_type = #tpu.core_type<tc>, window_params = [{transform_indices = @transform_0, window_bounds = array<i64: 1, 8, 32>}, {transform_indices = @transform_1, window_bounds = array<i64: 1, 32, 16>}, {transform_indices = @transform_2, window_bounds = array<i64: 1, 8, 16>}]} {
    %c0 = arith.constant 0 : index
    %c0_0 = arith.constant 0 : index
    %c0_1 = arith.constant 0 : index
    %0 = vector.load %arg1[%c0, %c0_0, %c0_1] : memref<1x8x32xf32, #tpu.memory_space<vmem>>, vector<1x8x32xf32>
    %1 = vector.shape_cast %0 : vector<1x8x32xf32> to vector<8x32xf32>
    %c0_2 = arith.constant 0 : index
    %c0_3 = arith.constant 0 : index
    %c0_4 = arith.constant 0 : index
    %2 = vector.load %arg2[%c0_2, %c0_3, %c0_4] : memref<1x32x16xf32, #tpu.memory_space<vmem>>, vector<1x32x16xf32>
    %3 = vector.shape_cast %2 : vector<1x32x16xf32> to vector<32x16xf32>
    %cst = arith.constant dense<0.000000e+00> : vector<8x16xf32>
    %4 = tpu.matmul %1, %3, %cst {dimension_numbers = #tpu.dot_dimension_numbers<[1], [0], [0], [1], [0, 0, 1, 1], [], []>} : vector<8x32xf32>, vector<32x16xf32>, vector<8x16xf32> -> vector<8x16xf32>
    %c0_5 = arith.constant 0 : index
    %c0_6 = arith.constant 0 : index
    %c0_7 = arith.constant 0 : index
    %5 = vector.load %arg3[%c0_5, %c0_6, %c0_7] : memref<1x8x16xf32, #tpu.memory_space<vmem>>, vector<1x8x16xf32>
    %6 = vector.shape_cast %5 : vector<1x8x16xf32> to vector<8x16xf32>
    %7 = vector.shape_cast %4 : vector<8x16xf32> to vector<1x8x16xf32>
    tpu.vector_store %arg3[%c0_5, %c0_6, %c0_7], %7 {strides = array<i32>} : memref<1x8x16xf32, #tpu.memory_space<vmem>>, vector<1x8x16xf32>,
    return
  }
  func.func @transform_0(%arg0: i32) -> (i32, i32, i32) {
    %c0_i32 = arith.constant 0 : i32
    %c0_i32_0 = arith.constant 0 : i32
    %c0_i32_1 = arith.constant 0 : i32
    return %arg0, %c0_i32, %c0_i32_0 : i32, i32, i32
  }
  func.func @transform_1(%arg0: i32) -> (i32, i32, i32) {
    %c0_i32 = arith.constant 0 : i32
    %c0_i32_0 = arith.constant 0 : i32
    %c0_i32_1 = arith.constant 0 : i32
    return %arg0, %c0_i32, %c0_i32_0 : i32, i32, i32
  }
  func.func @transform_2(%arg0: i32) -> (i32, i32, i32) {
    %c0_i32 = arith.constant 0 : i32
    %c0_i32_0 = arith.constant 0 : i32
    %c0_i32_1 = arith.constant 0 : i32
    return %arg0, %c0_i32, %c0_i32_0 : i32, i32, i32
  }
}

</mosaic_0001>

<bundles_post_ra>
// kernel: tpu_custom_call.1
= control target key start
LH: loop header
LB: loop body
LE: loop exit
PB: predicated region body
PF: predicated region fallthrough
CT: control target
= control target key end

     0   :  { %7 = vsyncpa [#allocation3], 0  ;;  %s497_s0 = inlined_call_operand.vmem [shape: f32[2,8,32], index: 0, kind: input, shape index: {}]   ;;  %s498_s1 = inlined_call_operand.vmem [shape: f32[2,32,16], index: 1, kind: input, shape index: {}]   ;;  %s499_s2 = inlined_call_operand.hbm [shape: f32[2,8,16], index: 2, kind: output, shape index: {}]  }
   0x1   :  { %9 = vsyncpa [#allocation3 + $0x1], 0  ;;  %s409_s9 = smov 0   ;;  %s411_s10 = smov 0  }
   0x2   :  { %s413_s11 = smov 0   ;;  %s415_s12 = smov 0  }
   0x3 LB: > { %s430_s13 = sadd.s32 4294967295, %s392_s12   ;;  %s277_s14 = sadd.s32 4294967294, %s392_s12   ;;  %s392_s12 = sphi %s415_s12, %s505_s12   ;;  %s388_s11 = sphi %s413_s11, %s504_s11   ;;  %s384_s10 = sphi %s411_s10, %s503_s10   ;;  %s380_s9 = sphi %s409_s9, %s502_s9  }
   0x4   : > { %s434_s15 = sadd.s32 1, %s392_s12   ;;  %s74_s16 = sadd.s32 1, %s388_s11 }
   0x5   : > { %s71_s17 = ssub.s32 %s392_s12, %s434_s15  ;;  %p84_p0 = scmp.ne.s32.totalorder %s388_s11, %s384_s10 }
   0x6   : > { %p72_p1 = scmp.eq.s32.totalorder %s71_s17, 0  ;;  %p85_p2 = scmp.eq.s32.totalorder %s430_s13, 1 }
   0x7   : > { %p90_p3 = scmp.ne.s32.totalorder %s384_s10, %s380_s9  ;;  %p91_p4 = scmp.eq.s32.totalorder %s277_s14, 1 }
   0x8   : > { %s445_s18 = scalar_select %p72_p1, %s388_s11, %s74_s16  }
   0x9   : > { %p447_p5 = por %p85_p2, %p84_p0  ;;  %p451_p6 = por %p91_p4, %p90_p3 }
   0xa   : > { %p280_p7 = scmp.ge.s32.totalorder %s392_s12, 1  ;;  %p124_p8 = scmp.lt.s32.totalorder %s392_s12, 3 }
   0xc   : > { %p125_p9 = pnand %p280_p7, %p124_p8 }
   0xd   : > { %p150_p10 = scmp.lt.s32.totalorder (!%p125_p9), %s430_s13, 1  ;;  %s147_s30 = sand.u32 (!%p125_p9), 1, %s384_s10  }
   0xe   : > { %128 = sbr.rel (%p125_p9) target bundleno = 160 (0xa0), region = 28  ;;  %s281_s3 = sshll.u32 (!%p125_p9), %s147_s30, 3 }
   0xf   : > { %s287_s4 = sshll.u32 (!%p125_p9), %s430_s13, 3  ;;  %s149_s8 = scalar_lea.vmem (!%p125_p9), [#allocation2], %s281_s3 }
  0x10   : > { %s201_s7 = scalar_lea.hbm (!%p125_p9), %s499_s2, %s287_s4  ;;  %s203_s14 = sshll.u32 (!%p125_p9), %s149_s8, 4  ;;  %s204_s14 = int_to_ptr.vmem [resolvable:$true] %s203_s14 }
  0x11   : > { %s205_s16 = sshll.u32 (!%p125_p9), %s201_s7, 4  ;;  %s191_s17 = scalar_lea.sflag (!%p125_p9), [#allocation3], %s147_s30  ;;  %s206_s16 = int_to_ptr.hbm [resolvable:$true] %s205_s16 }
  0x12   : > { %s350_s24 = scalar_lea.hbm (!%p125_p9), %s499_s2, 16 }
  0x13   : > { %s151_s21 = scalar_select %p150_p10, %s430_s13, 1  ;;  %vm164_vm0 = vcmask 261120   ;;  %vm188_vm1 = vcmask 130048  }
  0x15   : > { %s290_s22 = sshll.u32 %s151_s21, 5  ;;  %s282_s26 = sshll.u32 %s151_s21, 3 }
  0x16   : > { %s158_s25 = scalar_lea.vmem %s498_s1, %s290_s22  ;;  %s153_s29 = scalar_lea.vmem %s497_s0, %s282_s26 }
  0x17   : > { %v163_v0 = vld [vmem:[%s158_s25 + $0x18] sm:$0xff]  ;;  %v162_v1 = vld [vmem:[%s158_s25 + $0x10] sm:$0xff]  ;;  %v161_v2 = vld [vmem:[%s158_s25 + $0x8] sm:$0xff]  ;;  %s344_s21 = sshra.s32 %s206_s16, 4  ;;  %s345_s21 = int_to_ptr.hbm [resolvable:$true] %s344_s21 }
  0x18   : > { %180 = vmatpush.msra.mxu0 %v163_v0  ;;  %v160_v3 = vld [vmem:[%s158_s25] sm:$0xff]  ;;  %s346_s22 = scalar_lea.hbm %s345_s21, 8  ;;  %p351_p0 = scmp.lt.s32.totalorder %s345_s21, %s499_s2 }
  0x19   : > { %v159_v4 = vld [vmem:[%s153_s29] sm:$0xff]  ;;  %p347_p11 = scmp.ne.s32.totalorder %s345_s21, %s346_s22  ;;  %p352_p1 = scmp.lt.s32.totalorder %s350_s24, %s346_s22 }
  0x1a   : > { %181 = vmatpush.msra.mxu0 %v162_v1 }
  0x1b   : > { %p348_p12 = pnand %p347_p11, %p447_p5  ;;  %p353_p2 = por %p352_p1, %p351_p0 }
  0x1c   : > { %182 = vmatpush.msra.mxu0 %v161_v2 }
  0x1d   : > { %p349_p13 = pneg %p348_p12 }
  0x1e   : > { %183 = vmatpush.msra.mxu0 %v160_v3 }
  0x1f   : > { %285 = vmatmul.msk.f32.vlgmr.msra.gmra.mxu0 %vm164_vm0, %v159_v4  ;;  %p354_p3 = pnand %p353_p2, %p349_p13 }
  0x9c   : > { %v185_v5 = vpop.f32.mrf.mxu0 }
  0x9d   : > { %189 = vst.msk [vmem:[%s149_s8] sm:$0xff] %vm188_vm1, %v185_v5 }
  0x9e   : > { %357 = shalt.err (!%p354_p3)
}
  0x9f   : > { %291 = dma.vmem_to_hbm [thread:$0]  (%p447_p5), %s204_s14, 128, %s206_s16, %s191_s17  }
  0xa0 PF: > { %p297_p4 = scmp.ge.s32.totalorder %s392_s12, 2  ;;  %s217_s27 = sand.u32 1, %s380_s9  }
  0xa1   : > { %s218_s28 = scalar_lea.sflag [#allocation3], %s217_s27 }
  0xa2   : > { %p294_p7 = pnand %p297_p4, %p451_p6 }
  0xa4   : > { %p295_p8 = pneg %p294_p7 }
  0xa6   : > { %375 = dma.done.wait (%p295_p8), %s218_s28, 128  }
  0xa7   : > { %377 = vsyncadd (%p295_p8), %s218_s28, 4294967168  ;;  %p12_p9 = scmp.ge.s32.totalorder %s434_s15, 4   ;;  %s502_s9 = smov %s384_s10 }
  0xa8   : > { %s503_s10 = smov %s388_s11  ;;  %s504_s11 = smov %s445_s18 }
  0xa9   : > { %s505_s12 = smov %s434_s15  ;;  %14 = sbr.rel (!%p12_p9) target bundleno = 3 (0x3), region = 66 }
  0xae   :  { %224 = vsyncpa [#allocation3], 1 }
  0xaf   :  { %226 = vsyncpa [#allocation3 + $0x1], 1 }

</bundles_post_ra>
